<compile_context>
chip_gen: v7x
topology: tpu7x:2x2x1
jax: 0.10.0
libtpu: 0.0.40
codegen_flags: <defaults>
</compile_context>

<pallas_src>
import math

import jax
import jax.numpy as jnp
from jax.experimental import pallas as pl
from jax.experimental.pallas import tpu as pltpu

HIDDEN = 16          # hidden width of fc1/fc2 (fixed by the PyTorch module)
LANES = 128          # lane width every feature dim is padded to
MAX_TILE_B = 4096    # rows per batch tile (review: 1024 was too conservative)


def _round_up(n, m):
    return ((n + m - 1) // m) * m


def _sublane_multiple(dtype):
    """Native sublane packing: 8 for 32-bit, 16 for bf16/f16, 32 for 8-bit."""
    return max(8, 32 // jnp.dtype(dtype).itemsize)


def _num_tensorcores():
    """Best-effort: v7x exposes 2 TensorCores a 'parallel' axis can shard."""
    try:
        kind = jax.devices()[0].device_kind.lower()
        if "v7" in kind:
            return 2
    except Exception:
        pass
    return 1


# ----------------------------------------------------------------------------
# Kernel
# ----------------------------------------------------------------------------
def qnet_kernel(x_ref, w_ref, b_ref, out_ref):
    sd = x_ref.shape[1]          # padded state_dim (sublane-aligned, static)
    cdt = w_ref.dtype            # MXU compute dtype (bf16 or f32)
    biases = b_ref[...]          # (8, 128) f32; rows 0..2 = b1/b2/b3 (padded)

    # Cast activations to the MXU dtype in-kernel (VPU slots are idle here).
    x = x_ref[...].astype(cdt)

    # fc1 + relu : (TB, sd) @ (sd, 128) -> (TB, 128), f32 accumulation.
    h = jnp.dot(x, w_ref[0:sd, :], preferred_element_type=jnp.float32)
    h = jnp.maximum(h + biases[0:1, :], 0.0)

    # fc2 + relu : (TB, 128) @ (128, 128)  (rows/cols >= 16 of W2 are zero).
    h = jnp.dot(h.astype(cdt), w_ref[LANES:2 * LANES, :],
                preferred_element_type=jnp.float32)
    h = jnp.maximum(h + biases[1:2, :], 0.0)

    # fc3 : (TB, 128) @ (128, 128)  (cols >= action_num of W3 are zero).
    h = jnp.dot(h.astype(cdt), w_ref[2 * LANES:3 * LANES, :],
                preferred_element_type=jnp.float32)
    out_ref[...] = (h + biases[2:3, :]).astype(out_ref.dtype)


# ----------------------------------------------------------------------------
# Parameter packing (done ONCE per weight update, not per forward)
# ----------------------------------------------------------------------------
def pack_params(params, compute_dtype=jnp.bfloat16):
    """Pack (w1,b1,w2,b2,w3,b3) into one weight slab and one bias slab."""
    w1, b1, w2, b2, w3, b3 = params
    state_dim = w1.shape[0]
    action_num = w3.shape[1]
    assert w1.shape == (state_dim, HIDDEN)
    assert w2.shape == (HIDDEN, HIDDEN)
    assert w3.shape == (HIDDEN, action_num)
    # TODO(synk): support state_dim/action_num > 128 by widening the W1/W3 bands.
    assert state_dim <= LANES and action_num <= LANES

    w_slab = jnp.zeros((3 * LANES, LANES), compute_dtype)
    w_slab = w_slab.at[0:state_dim, 0:HIDDEN].set(w1.astype(compute_dtype))
    w_slab = w_slab.at[LANES:LANES + HIDDEN, 0:HIDDEN].set(
        w2.astype(compute_dtype))
    w_slab = w_slab.at[2 * LANES:2 * LANES + HIDDEN, 0:action_num].set(
        w3.astype(compute_dtype))

    b_slab = jnp.zeros((8, LANES), jnp.float32)            # biases stay f32
    b_slab = b_slab.at[0, 0:HIDDEN].set(b1.reshape(-1))
    b_slab = b_slab.at[1, 0:HIDDEN].set(b2.reshape(-1))
    b_slab = b_slab.at[2, 0:action_num].set(b3.reshape(-1))
    return w_slab, b_slab


# ----------------------------------------------------------------------------
# Forward on packed params
# ----------------------------------------------------------------------------
def qnet_forward_packed(x, w_slab, b_slab, action_num, *,
                        tile_b=None, out_dtype=jnp.float32):
    batch, state_dim = x.shape
    assert state_dim <= LANES

    # Align the W1 band slice (and x's feature dim) to the compute dtype's
    # sublane packing so the in-kernel slice is a free view.
    sd_pad = _round_up(max(state_dim, 1), _sublane_multiple(w_slab.dtype))

    # Batch tiling: balanced tiles, multiple of the strictest sublane packing
    # among x / out dtypes, capped at MAX_TILE_B; at least #TensorCores tiles
    # (v7x megacore) when the batch is big enough to split.
    tile_mult = max(_sublane_multiple(x.dtype), _sublane_multiple(out_dtype))
    if tile_b is None:
        n_tiles = pl.cdiv(max(batch, 1), MAX_TILE_B)
        if batch >= 2 * tile_mult:
            n_tiles = max(n_tiles, _num_tensorcores())
        tile_b = _round_up(pl.cdiv(max(batch, 1), n_tiles), tile_mult)
    elif tile_b % tile_mult:
        raise ValueError(f"tile_b must be a multiple of {tile_mult}")

    batch_pad = _round_up(max(batch, 1), tile_b)
    grid = (batch_pad // tile_b,)

    x_pad = x
    if batch_pad != batch or sd_pad != state_dim:
        x_pad = jnp.pad(x, ((0, batch_pad - batch), (0, sd_pad - state_dim)))
    # NOTE: no dtype cast here; x stays f32 and is cast inside the kernel.

    # VMEM budget derived from the actual (double-buffered) blocks, capped at
    # 32 MiB so the same choice is safe on v7x's 64 MiB VMEM.
    x_blk_bytes = tile_b * sd_pad * x.dtype.itemsize
    out_blk_bytes = tile_b * LANES * jnp.dtype(out_dtype).itemsize
    slab_bytes = 3 * LANES * LANES * w_slab.dtype.itemsize + 8 * LANES * 4
    vmem_limit = 2 * (x_blk_bytes + out_blk_bytes) + 2 * slab_bytes + (2 << 20)
    vmem_limit = int(min(max(vmem_limit, 4 << 20), 32 << 20))

    flops = 2 * batch_pad * (sd_pad * HIDDEN + HIDDEN * HIDDEN
                             + HIDDEN * action_num)
    bytes_accessed = int(
        batch_pad * sd_pad * x.dtype.itemsize                 # x
        + slab_bytes                                          # weights+biases
        + batch_pad * LANES * jnp.dtype(out_dtype).itemsize)  # output

    out_pad = pl.pallas_call(
        qnet_kernel,
        out_shape=jax.ShapeDtypeStruct((batch_pad, LANES), out_dtype),
        grid=grid,
        in_specs=[
            # x: tiled over batch.
            pl.BlockSpec((tile_b, sd_pad), lambda i: (i, 0)),
            # Packed weights: VMEM-resident across the whole grid.
            pl.BlockSpec((3 * LANES, LANES), lambda i: (0, 0)),
            # Packed biases: VMEM-resident.
            pl.BlockSpec((8, LANES), lambda i: (0, 0)),
        ],
        out_specs=pl.BlockSpec((tile_b, LANES), lambda i: (i, 0)),
        compiler_params=pltpu.CompilerParams(
            dimension_semantics=("parallel",),
            vmem_limit_bytes=vmem_limit,
        ),
        cost_estimate=pl.CostEstimate(
            flops=flops, transcendentals=0, bytes_accessed=bytes_accessed),
    )(x_pad, w_slab, b_slab)

    return out_pad[:batch, :action_num]


def make_qnet_forward(params, *, compute_dtype=jnp.bfloat16,
                      out_dtype=jnp.float32, tile_b=None):
    """Pack params once; return a jitted forward closure (slabs cached).

    NOTE: compute_dtype=bf16 rounds x and all weights to bf16 (f32
    accumulation).  Fine for action selection; use compute_dtype=jnp.float32
    for TD-target computation if exact f32 Q-values are required.
    """
    action_num = params[4].shape[1]
    w_slab, b_slab = pack_params(params, compute_dtype)

    @jax.jit
    def forward(x):
        return qnet_forward_packed(x, w_slab, b_slab, action_num,
                                   tile_b=tile_b, out_dtype=out_dtype)

    return forward


# ----------------------------------------------------------------------------
# Init + reference (mimics PyTorch nn.Linear init / forward)
# ----------------------------------------------------------------------------
def init_linear(key, fan_in, fan_out):
    kw, kb = jax.random.split(key)
    bound = 1.0 / math.sqrt(fan_in)
    # Stored as [in, out] so forward computes x @ W (== x @ W_pt.T).
    w = jax.random.uniform(kw, (fan_in, fan_out), jnp.float32, -bound, bound)
    b = jax.random.uniform(kb, (fan_out,), jnp.float32, -bound, bound)
    return w, b


def init_params(key, state_dim, action_num):
    k1, k2, k3 = jax.random.split(key, 3)
    w1, b1 = init_linear(k1, state_dim, HIDDEN)
    w2, b2 = init_linear(k2, HIDDEN, HIDDEN)
    w3, b3 = init_linear(k3, HIDDEN, action_num)
    return (w1, b1, w2, b2, w3, b3)


def reference_forward(x, params):
    w1, b1, w2, b2, w3, b3 = params
    a = jnp.maximum(x @ w1 + b1, 0.0)
    a = jnp.maximum(a @ w2 + b2, 0.0)
    return a @ w3 + b3


if __name__ == "__main__":
    key = jax.random.PRNGKey(0)
    k_params, k_x, k_x2 = jax.random.split(key, 3)

    batch, state_dim, action_num = 2, 4, 2
    params = init_params(k_params, state_dim, action_num)
    x = jax.random.normal(k_x, (batch, state_dim), jnp.float32)
    ref = reference_forward(x, params)

    # Exact f32 path (packing hoisted, forward jitted).
    fwd_f32 = make_qnet_forward(params, compute_dtype=jnp.float32,
                                out_dtype=jnp.float32)
    out_f32 = jax.block_until_ready(fwd_f32(x))
    assert out_f32.shape == (batch, action_num)
    assert jnp.allclose(out_f32, ref, atol=1e-4, rtol=1e-4)

    # Default fast path: bf16 MXU inputs, f32 accumulation, f32 output.
    fwd = make_qnet_forward(params)
    out_bf16 = jax.block_until_ready(fwd(x))
    assert out_bf16.shape == (batch, action_num)
    assert jnp.allclose(out_bf16, ref, atol=5e-2, rtol=5e-2)

    # bf16-output path: halves the dominant output HBM stream.
    fwd_bf16_out = make_qnet_forward(params, out_dtype=jnp.bfloat16)
    out_b = jax.block_until_ready(fwd_bf16_out(x))
    assert out_b.dtype == jnp.bfloat16
    assert jnp.allclose(out_b.astype(jnp.float32), ref, atol=7e-2, rtol=7e-2)

    # Larger, awkward batch exercising multi-tile / padding paths (exact f32).
    big_batch = 300
    xb = jax.random.normal(k_x2, (big_batch, state_dim), jnp.float32)
    out_big = jax.block_until_ready(fwd_f32(xb))
    assert out_big.shape == (big_batch, action_num)
    assert jnp.allclose(out_big, reference_forward(xb, params),
                        atol=1e-4, rtol=1e-4)

    print("KERNEL_OK")
</pallas_src>

<mosaic_0001>
module attributes {stable_mosaic.version = 11 : i64} {
  func.func @qnet_kernel(%arg0: i32, %arg1: memref<8x8xf32, #tpu.memory_space<vmem>>, %arg2: memref<384x128xf32, #tpu.memory_space<vmem>>, %arg3: memref<8x128xf32, #tpu.memory_space<vmem>>, %arg4: memref<8x128xf32, #tpu.memory_space<vmem>>) attributes {dimension_semantics = [#tpu.dimension_semantics<parallel>], iteration_bounds = array<i64: 1>, scalar_prefetch = 0 : i64, scratch_operands = 0 : i64, tpu.core_type = #tpu.core_type<tc>, window_params = [{transform_indices = @transform_0, window_bounds = array<i64: 8, 8>}, {pipeline_mode = #tpu.pipeline_mode<synchronous>, transform_indices = @transform_1, window_bounds = array<i64: 384, 128>}, {pipeline_mode = #tpu.pipeline_mode<synchronous>, transform_indices = @transform_2, window_bounds = array<i64: 8, 128>}, {transform_indices = @transform_3, window_bounds = array<i64: 8, 128>}]} {
    %c0 = arith.constant 0 : index
    %c0_0 = arith.constant 0 : index
    %0 = vector.load %arg3[%c0, %c0_0] : memref<8x128xf32, #tpu.memory_space<vmem>>, vector<8x128xf32>
    %c0_1 = arith.constant 0 : index
    %c0_2 = arith.constant 0 : index
    %1 = vector.load %arg1[%c0_1, %c0_2] : memref<8x8xf32, #tpu.memory_space<vmem>>, vector<8x8xf32>
    %c0_3 = arith.constant 0 : index
    %c0_4 = arith.constant 0 : index
    %2 = vector.load %arg2[%c0_3, %c0_4] : memref<384x128xf32, #tpu.memory_space<vmem>>, vector<8x128xf32>
    %cst = arith.constant dense<0.000000e+00> : vector<8x128xf32>
    %3 = tpu.matmul %1, %2, %cst {dimension_numbers = #tpu.dot_dimension_numbers<[1], [0], [0], [1], [0, 0, 1, 1], [], []>} : vector<8x8xf32>, vector<8x128xf32>, vector<8x128xf32> -> vector<8x128xf32>
    %4 = vector.extract_strided_slice %0 {offsets = [0, 0], sizes = [1, 128], strides = [1, 1]} : vector<8x128xf32> to vector<1x128xf32>
    %5 = vector.broadcast %4 : vector<1x128xf32> to vector<8x128xf32>
    %6 = arith.addf %3, %5 : vector<8x128xf32>
    %cst_5 = arith.constant 0.000000e+00 : f32
    %7 = vector.broadcast %cst_5 : f32 to vector<8x128xf32>
    %8 = arith.maximumf %6, %7 : vector<8x128xf32>
    %c128 = arith.constant 128 : index
    %c0_6 = arith.constant 0 : index
    %9 = vector.load %arg2[%c128, %c0_6] : memref<384x128xf32, #tpu.memory_space<vmem>>, vector<128x128xf32>
    %cst_7 = arith.constant dense<0.000000e+00> : vector<8x128xf32>
    %10 = tpu.matmul %8, %9, %cst_7 {dimension_numbers = #tpu.dot_dimension_numbers<[1], [0], [0], [1], [0, 0, 1, 1], [], []>} : vector<8x128xf32>, vector<128x128xf32>, vector<8x128xf32> -> vector<8x128xf32>
    %11 = vector.extract_strided_slice %0 {offsets = [1, 0], sizes = [1, 128], strides = [1, 1]} : vector<8x128xf32> to vector<1x128xf32>
    %12 = vector.broadcast %11 : vector<1x128xf32> to vector<8x128xf32>
    %13 = arith.addf %10, %12 : vector<8x128xf32>
    %cst_8 = arith.constant 0.000000e+00 : f32
    %14 = vector.broadcast %cst_8 : f32 to vector<8x128xf32>
    %15 = arith.maximumf %13, %14 : vector<8x128xf32>
    %c256 = arith.constant 256 : index
    %c0_9 = arith.constant 0 : index
    %16 = vector.load %arg2[%c256, %c0_9] : memref<384x128xf32, #tpu.memory_space<vmem>>, vector<128x128xf32>
    %cst_10 = arith.constant dense<0.000000e+00> : vector<8x128xf32>
    %17 = tpu.matmul %15, %16, %cst_10 {dimension_numbers = #tpu.dot_dimension_numbers<[1], [0], [0], [1], [0, 0, 1, 1], [], []>} : vector<8x128xf32>, vector<128x128xf32>, vector<8x128xf32> -> vector<8x128xf32>
    %18 = vector.extract_strided_slice %0 {offsets = [2, 0], sizes = [1, 128], strides = [1, 1]} : vector<8x128xf32> to vector<1x128xf32>
    %19 = vector.broadcast %18 : vector<1x128xf32> to vector<8x128xf32>
    %20 = arith.addf %17, %19 : vector<8x128xf32>
    %c0_11 = arith.constant 0 : index
    %c0_12 = arith.constant 0 : index
    %21 = vector.load %arg4[%c0_11, %c0_12] : memref<8x128xf32, #tpu.memory_space<vmem>>, vector<8x128xf32>
    tpu.vector_store %arg4[%c0_11, %c0_12], %20 {strides = array<i32>} : memref<8x128xf32, #tpu.memory_space<vmem>>, vector<8x128xf32>,
    return
  }
  func.func @transform_0(%arg0: i32) -> (i32, i32) {
    %c0_i32 = arith.constant 0 : i32
    %c0_i32_0 = arith.constant 0 : i32
    return %arg0, %c0_i32 : i32, i32
  }
  func.func @transform_1(%arg0: i32) -> (i32, i32) {
    %c0_i32 = arith.constant 0 : i32
    %c0_i32_0 = arith.constant 0 : i32
    %c0_i32_1 = arith.constant 0 : i32
    return %c0_i32, %c0_i32_0 : i32, i32
  }
  func.func @transform_2(%arg0: i32) -> (i32, i32) {
    %c0_i32 = arith.constant 0 : i32
    %c0_i32_0 = arith.constant 0 : i32
    %c0_i32_1 = arith.constant 0 : i32
    return %c0_i32, %c0_i32_0 : i32, i32
  }
  func.func @transform_3(%arg0: i32) -> (i32, i32) {
    %c0_i32 = arith.constant 0 : i32
    %c0_i32_0 = arith.constant 0 : i32
    return %arg0, %c0_i32 : i32, i32
  }
}

</mosaic_0001>

<bundles_post_ra>
// kernel: forward.1
= control target key start
LH: loop header
LB: loop body
LE: loop exit
PB: predicated region body
PF: predicated region fallthrough
CT: control target
= control target key end

     0   :  { %8 = vsyncpa [#allocation3], 0  ;;  %s487_s12 = smov [#allocation2]   ;;  %s553_s0 = inlined_call_operand.vmem [shape: f32[8,8], index: 0, kind: input, shape index: {}]   ;;  %s554_s1 = inlined_call_operand.hbm [shape: f32[384,128], index: 1, kind: input, shape index: {}]   ;;  %s555_s2 = inlined_call_operand.vmem [shape: f32[8,128], index: 2, kind: input, shape index: {}]   ;;  %s556_s3 = inlined_call_operand.vmem [shape: f32[8,128], index: 3, kind: output, shape index: {}]  }
   0x1   :  { %s16_s13 = sshll.u32 %s487_s12, 4  ;;  %s463_s16 = scalar_lea.hbm %s554_s1, 6144  ;;  %s17_s13 = int_to_ptr.vmem [resolvable:$true] %s16_s13 }
   0x2   :  { %p464_p0 = scmp.ne.s32.totalorder %s554_s1, %s463_s16  ;;  %p467_p1 = scmp.lt.u32.totalorder %s463_s16, %s554_s1 }
   0x4   :  { %p469_p2 = pnand %p467_p1, %p464_p0 }
   0x6   :  { %472 = shalt.err (!%p469_p2)
}
   0x7   :  { %s473_s21 = scalar_lea.vmem %s17_s13, 6144  ;;  %p478_p4 = scmp.lt.s32.totalorder %s17_s13, %s17_s13 }
   0x8   :  { %p474_p3 = scmp.ne.s32.totalorder %s17_s13, %s473_s21  ;;  %p479_p5 = scmp.lt.s32.totalorder %s473_s21, %s473_s21 }
   0xa   :  { %p480_p6 = por %p479_p5, %p478_p4 }
   0xc   :  { %p481_p7 = pnand %p480_p6, %p474_p3 }
   0xe   :  { %484 = shalt.err (!%p481_p7)
}
   0xf   :  { %s488_s22 = smov 128   ;;  %s489_s23 = smov 8  }
  0x10   :  { %22 = dma.hbm_to_vmem [thread:$0]  %s554_s1, 6144, %s17_s13, [#allocation3], %s488_s22, %s488_s22, %s489_s23  }
  0x11   :  { %485 = dma.done.wait [#allocation3], 6144  }
  0x12   :  { %486 = vsyncadd [#allocation3], 4294961152  ;;  %v490_v0 = vmov 0.0   ;;  %vm491_vm0 = vmmov 0   ;;  %v492_v1 = vmov 0.0|0.0   ;;  %vm35_vm1 = vcmask 64512  }
  0x13   :  { %334 = vmatprep.subr.mxu0 %v490_v0  ;;  %336 = vmatprep.mubr.msk.f32.mxu0 %vm491_vm0, %v490_v0  ;;  %v30_v2 = vld [vmem:[#allocation2] sm:$0xff]  ;;  %v29_v3 = vld [vmem:[%s553_s0] sm:$0xff]  ;;  %v111_v5 = vld [vmem:[#allocation2 + $0x88] sm:$0xff]  ;;  %v31_v49 = vlaneseq }
  0x14   :  { %409 = vmatprep.subr.bf16.mxu1 %v492_v1  ;;  %371 = vmatprep.mubr.msk.f32.mxu1 %vm491_vm0, %v490_v0  ;;  %v110_v4 = vld [vmem:[#allocation2 + $0x80] sm:$0xff]  ;;  %v112_v6 = vld [vmem:[#allocation2 + $0x90] sm:$0xff]  ;;  %v113_v7 = vld [vmem:[#allocation2 + $0x98] sm:$0xff] }
  0x15   :  { %335 = vmatpush3.msra.mxu0 %v30_v2  ;;  %v410_v8 = vpack.c.bf16 %v111_v5, %v110_v4  ;;  %v413_v9 = vpack.c.bf16 %v113_v7, %v112_v6  ;;  %v114_v10 = vld [vmem:[#allocation2 + $0xa0] sm:$0xff]  ;;  %v115_v11 = vld [vmem:[#allocation2 + $0xa8] sm:$0xff]  ;;  %v116_v13 = vld [vmem:[#allocation2 + $0xb0] sm:$0xff]  ;;  %v32_v50 = vshrl.u32 %v31_v49, 7 }
  0x16   :  { %337 = vmatmul.mubr.msk.f32.vlgmr.msra.gmra.mrb[0].mxu0 %vm35_vm1, %v29_v3  ;;  %433 = vmatprep.subr.bf16.mxu0 %v492_v1  ;;  %v416_v12 = vpack.c.bf16 %v115_v11, %v114_v10  ;;  %v117_v14 = vld [vmem:[#allocation2 + $0xb8] sm:$0xff]  ;;  %v118_v16 = vld [vmem:[#allocation2 + $0xc0] sm:$0xff]  ;;  %v119_v17 = vld [vmem:[#allocation2 + $0xc8] sm:$0xff] }
  0x17   :  { %406 = vmatprep.mubr.msk.f32.mxu0 %vm491_vm0, %v490_v0  ;;  %411 = vmatpush3.bf16.msra.mxu1 %v410_v8  ;;  %v419_v15 = vpack.c.bf16 %v117_v14, %v116_v13  ;;  %v422_v18 = vpack.c.bf16 %v119_v17, %v118_v16  ;;  %v120_v19 = vld [vmem:[#allocation2 + $0xd0] sm:$0xff]  ;;  %v121_v20 = vld [vmem:[#allocation2 + $0xd8] sm:$0xff]  ;;  %v122_v22 = vld [vmem:[#allocation2 + $0xe0] sm:$0xff]  ;;  %v33_v51 = vsub.s32 0, %v32_v50  ;;  %v128_v61 = vsub.s32 1, %v32_v50 }
  0x18   :  { %412 = vmatprep.subr.bf16.mxu1 %v492_v1  ;;  %v425_v21 = vpack.c.bf16 %v121_v20, %v120_v19  ;;  %v123_v23 = vld [vmem:[#allocation2 + $0xe8] sm:$0xff]  ;;  %v124_v25 = vld [vmem:[#allocation2 + $0xf0] sm:$0xff]  ;;  %v125_v26 = vld [vmem:[#allocation2 + $0xf8] sm:$0xff]  ;;  %v219_v3 = vsub.s32 2, %v32_v50 }
  0x19   :  { %v428_v24 = vpack.c.bf16 %v123_v23, %v122_v22  ;;  %v431_v27 = vpack.c.bf16 %v125_v26, %v124_v25  ;;  %v201_v28 = vld [vmem:[#allocation2 + $0x100] sm:$0xff]  ;;  %v202_v29 = vld [vmem:[#allocation2 + $0x108] sm:$0xff]  ;;  %v203_v30 = vld [vmem:[#allocation2 + $0x110] sm:$0xff] }
  0x1a   :  { %v434_v31 = vpack.c.bf16 %v202_v29, %v201_v28  ;;  %v204_v32 = vld [vmem:[#allocation2 + $0x118] sm:$0xff]  ;;  %v205_v34 = vld [vmem:[#allocation2 + $0x120] sm:$0xff]  ;;  %v206_v35 = vld [vmem:[#allocation2 + $0x128] sm:$0xff] }
  0x1b   :  { %414 = vmatpush3.bf16.msra.mxu1 %v413_v9  ;;  %v437_v33 = vpack.c.bf16 %v204_v32, %v203_v30  ;;  %v440_v36 = vpack.c.bf16 %v206_v35, %v205_v34  ;;  %v207_v37 = vld [vmem:[#allocation2 + $0x130] sm:$0xff]  ;;  %v208_v38 = vld [vmem:[#allocation2 + $0x138] sm:$0xff]  ;;  %v209_v40 = vld [vmem:[#allocation2 + $0x140] sm:$0xff] }
  0x1c   :  { %415 = vmatprep.subr.bf16.mxu1 %v492_v1  ;;  %435 = vmatpush3.bf16.msra.mxu0 %v434_v31  ;;  %v443_v39 = vpack.c.bf16 %v208_v38, %v207_v37  ;;  %v210_v41 = vld [vmem:[#allocation2 + $0x148] sm:$0xff]  ;;  %v211_v43 = vld [vmem:[#allocation2 + $0x150] sm:$0xff]  ;;  %v212_v44 = vld [vmem:[#allocation2 + $0x158] sm:$0xff] }
  0x1d   :  { %436 = vmatprep.subr.bf16.mxu0 %v492_v1  ;;  %v446_v42 = vpack.c.bf16 %v210_v41, %v209_v40  ;;  %v449_v45 = vpack.c.bf16 %v212_v44, %v211_v43  ;;  %v213_v46 = vld [vmem:[#allocation2 + $0x160] sm:$0xff]  ;;  %v214_v47 = vld [vmem:[#allocation2 + $0x168] sm:$0xff]  ;;  %v28_v52 = vld [vmem:[%s555_s2] sm:$0xff] }
  0x1e   :  { %v452_v48 = vpack.c.bf16 %v214_v47, %v213_v46  ;;  %v34_v53 = vrot.slane %v28_v52, %v33_v51  ;;  %v215_v58 = vld [vmem:[#allocation2 + $0x170] sm:$0xff]  ;;  %v216_v59 = vld [vmem:[#allocation2 + $0x178] sm:$0xff]  ;;  %v129_v62 = vrot.slane %v28_v52, %v128_v61  ;;  %v220_v4 = vrot.slane %v28_v52, %v219_v3 }
  0x1f   :  { %417 = vmatpush3.bf16.msra.mxu1 %v416_v12  ;;  %v455_v60 = vpack.c.bf16 %v216_v59, %v215_v58 }
  0x20   :  { %418 = vmatprep.subr.bf16.mxu1 %v492_v1  ;;  %438 = vmatpush3.bf16.msra.mxu0 %v437_v33 }
  0x21   :  { %439 = vmatprep.subr.bf16.mxu0 %v492_v1 }
  0x23   :  { %420 = vmatpush3.bf16.msra.mxu1 %v419_v15 }
  0x24   :  { %421 = vmatprep.subr.bf16.mxu1 %v492_v1  ;;  %441 = vmatpush3.bf16.msra.mxu0 %v440_v36 }
  0x25   :  { %442 = vmatprep.subr.bf16.mxu0 %v492_v1 }
  0x27   :  { %423 = vmatpush3.bf16.msra.mxu1 %v422_v18 }
  0x28   :  { %424 = vmatprep.subr.bf16.mxu1 %v492_v1  ;;  %444 = vmatpush3.bf16.msra.mxu0 %v443_v39 }
  0x29   :  { %445 = vmatprep.subr.bf16.mxu0 %v492_v1 }
  0x2b   :  { %426 = vmatpush3.bf16.msra.mxu1 %v425_v21 }
  0x2c   :  { %427 = vmatprep.subr.bf16.mxu1 %v492_v1  ;;  %447 = vmatpush3.bf16.msra.mxu0 %v446_v42 }
  0x2d   :  { %448 = vmatprep.subr.bf16.mxu0 %v492_v1 }
  0x2f   :  { %429 = vmatpush3.bf16.msra.mxu1 %v428_v24 }
  0x30   :  { %430 = vmatprep.subr.bf16.mxu1 %v492_v1  ;;  %450 = vmatpush3.bf16.msra.mxu0 %v449_v45 }
  0x31   :  { %451 = vmatprep.subr.bf16.mxu0 %v492_v1 }
  0x33   :  { %432 = vmatpush3.bf16.msra.mxu1 %v431_v27 }
  0x34   :  { %453 = vmatpush3.bf16.msra.mxu0 %v452_v48 }
  0x35   :  { %454 = vmatprep.subr.bf16.mxu0 %v492_v1 }
  0x38   :  { %456 = vmatpush3.bf16.msra.mxu0 %v455_v60 }
  0xe9   :  { %v105_v54 = vpop.f32.mrb[0].mxu0 }
  0xea   :  { %v106_v55 = vadd.f32 %v105_v54, %v34_v53  ;;  %v338_v56 = vpop.f32.mrb[1].mxu0 }
  0xec   :  { %v109_v57 = vmax.f32 %v106_v55, 0.0 }
  0xee   :  { %372 = vmatmul.mubr.f32.vlgmr.msra.gmra.mrb[0].mxu1 %v109_v57 }
 0x1c1   :  { %v196_v63 = vpop.f32.mrb[0].mxu1 }
 0x1c2   :  { %v197_v0 = vadd.f32 %v196_v63, %v129_v62  ;;  %v373_v1 = vpop.f32.mrb[1].mxu1 }
 0x1c4   :  { %v200_v2 = vmax.f32 %v197_v0, 0.0 }
 0x1c6   :  { %407 = vmatmul.mubr.f32.vlgmr.msra.gmra.mrb[2].mxu0 %v200_v2 }
 0x299   :  { %v287_v5 = vpop.f32.mrb[2].mxu0 }
 0x29a   :  { %v288_v6 = vadd.f32 %v287_v5, %v220_v4  ;;  %v408_v7 = vpop.f32.mrb[3].mxu0 }
 0x29c   :  { %291 = vst [vmem:[%s556_s3] sm:$0xff] %v288_v6 }
 0x29d   :  { %296 = vsyncpa [#allocation3], 1 }

</bundles_post_ra>
